<compile_context>
chip_gen: v6e
topology: v6e:2x2x1
jax: 0.10.0
libtpu: 0.0.40
codegen_flags: <defaults>
</compile_context>

<pallas_src>
import jax
import jax.numpy as jnp
from jax.experimental import pallas as pl
from jax.experimental.pallas import tpu as pltpu


def convkb_kernel(fcb_ref,       # SMEM (1,)        fc bias
                  hrt_ref,       # VMEM (3D, tile)  [h;r;t] gathered embeddings, batch on lanes
                  w3_ref,        # VMEM (C*D, 3D)   folded conv weights
                  bcol_ref,      # VMEM (C*D, 1)    folded conv bias (per (c,d) row)
                  fcw_ref,       # VMEM (1, C*D)    flattened fc weight (channel-major)
                  out_ref):      # VMEM (1, tile)   lane-dense scores
    x = hrt_ref[...].astype(jnp.float32)                                   # (3D, tile)
    # Conv2d(1,C,(1,3)) as one MXU matmul: s[c*D+d, b] = wh[c]*h[d,b]+wr[c]*r[d,b]+wt[c]*t[d,b]
    s = jnp.dot(w3_ref[...], x, preferred_element_type=jnp.float32)        # (C*D, tile)
    s = jnp.maximum(s + bcol_ref[...], 0.0)                                # + bias, ReLU
    # fc layer as one MXU matmul -> (1, tile) lane-dense output block.
    res = jnp.dot(fcw_ref[...], s, preferred_element_type=jnp.float32)     # (1, tile)
    out_ref[...] = res + fcb_ref[0]


def spkbgat_conv_only_forward(entity_emb, relation_emb, batch_inputs,
                              conv_w, conv_b, fc_w, fc_b,
                              *, batch_tile=4096, stream_dtype=jnp.float32):
    """entity_emb (N, D), relation_emb (R, D), batch_inputs (B, 3) int32.
    conv_w (C, 3) [Conv2d(1,C,(1,3)) weight squeezed], conv_b (C,),
    fc_w (1, C*D) [nn.Linear(C*D,1) weight], fc_b (1,).
    Returns (B, 1) float32 ConvKB scores."""
    B = batch_inputs.shape[0]
    D = entity_emb.shape[1]
    C = conv_w.shape[0]
    CD = C * D
    D3 = 3 * D

    # --- batch tile selection: multiple of 128 (lane-dense output); for small batches shrink so
    #     the grid has >= 2 "parallel" steps (v7x has 2 TensorCores sharing the chip) ---
    tile = max(128, (int(batch_tile) // 128) * 128)
    bp128 = pl.cdiv(B, 128) * 128
    if tile >= bp128:
        tile = max(128, ((bp128 // 2) // 128) * 128)
    Bp = pl.cdiv(B, tile) * tile

    # --- pad the tiny index array (index 0 is always valid), NOT the gathered embeddings ---
    idx = batch_inputs.astype(jnp.int32)
    if Bp != B:
        idx = jnp.pad(idx, ((0, Bp - B), (0, 0)))

    # --- gather from pre-transposed tables directly into the (3D, Bp) batch-on-lanes layout ---
    # (At production scale the tables would be stored bf16 / pre-transposed once; this cast and
    #  transpose are on the small tables, not the big gathered array.)
    ent_T = entity_emb.astype(stream_dtype).T          # (D, N)
    rel_T = relation_emb.astype(stream_dtype).T        # (D, R)
    hrtT = jnp.concatenate([ent_T[:, idx[:, 0]],
                            rel_T[:, idx[:, 1]],
                            ent_T[:, idx[:, 2]]], axis=0)          # (3D, Bp)

    # --- fold conv weights/bias into a (C*D, 3D) matrix + (C*D, 1) bias column; flat row index
    #     is c*D + d, matching PyTorch's channel-major .view(B, -1) flatten ---
    eye = jnp.eye(D, dtype=jnp.float32)
    w3 = jnp.concatenate(
        [jnp.kron(conv_w[:, j:j + 1].astype(jnp.float32), eye) for j in range(3)],
        axis=1)                                                     # (C*D, 3D)
    bcol = jnp.repeat(conv_b.astype(jnp.float32), D).reshape(CD, 1)  # (C*D, 1)
    fcw_row = fc_w.reshape(1, CD).astype(jnp.float32)               # (1, C*D)

    out = pl.pallas_call(
        convkb_kernel,
        out_shape=jax.ShapeDtypeStruct((1, Bp), jnp.float32),
        grid=(Bp // tile,),
        in_specs=[
            pl.BlockSpec(memory_space=pltpu.MemorySpace.SMEM),   # fc_b (1,)
            pl.BlockSpec((D3, tile), lambda i: (0, i)),          # hrtT streaming input
            pl.BlockSpec((CD, D3), lambda i: (0, 0)),            # W3   (resident)
            pl.BlockSpec((CD, 1), lambda i: (0, 0)),             # bias column (resident)
            pl.BlockSpec((1, CD), lambda i: (0, 0)),             # fc weight row (resident)
        ],
        out_specs=pl.BlockSpec((1, tile), lambda i: (0, i)),     # lane-dense output
        compiler_params=pltpu.CompilerParams(
            dimension_semantics=("parallel",)),
    )(fc_b.astype(jnp.float32), hrtT, w3, bcol, fcw_row)

    return out[0, :B].reshape(B, 1)


def reference_forward(entity_emb, relation_emb, batch_inputs, conv_w, conv_b, fc_w, fc_b):
    # Pure-JAX reference matching the PyTorch ConvKB math exactly.
    h = entity_emb[batch_inputs[:, 0], :]
    r = relation_emb[batch_inputs[:, 1], :]
    t = entity_emb[batch_inputs[:, 2], :]
    B, D = h.shape
    C = conv_w.shape[0]
    conv = (conv_w[None, :, 0, None] * h[:, None, :]
            + conv_w[None, :, 1, None] * r[:, None, :]
            + conv_w[None, :, 2, None] * t[:, None, :]
            + conv_b[None, :, None])                              # (B, C, D)
    act = jnp.maximum(conv, 0.0)
    flat = act.reshape(B, C * D)                                  # channel-major, like .view(B,-1)
    return flat @ fc_w.reshape(C * D, 1) + fc_b[None, :]          # (B, 1)


if __name__ == "__main__":
    # Module config (consistent with SpKBGATConvOnly.__init__):
    #   entity_out_dim = [8], nheads_GAT = [4] -> emb_dim = 32
    num_nodes = 64
    num_relation = 8
    emb_dim = 32
    conv_out_channels = 4
    batch = 500   # not a multiple of 128 -> exercises index padding + multi-step grid

    key = jax.random.PRNGKey(0)
    k_ent, k_rel, k_cw, k_cb, k_fw, k_fb, k_bi = jax.random.split(key, 7)

    # final_entity_embeddings_mean / final_relation_embeddings_mean (nn.Parameter clones)
    entity_emb = jax.random.normal(k_ent, (num_nodes, emb_dim), jnp.float32) * 0.1
    relation_emb = jax.random.normal(k_rel, (num_relation, emb_dim), jnp.float32) * 0.1

    # ConvKB params: Conv2d(1, C, (1,3)) weight (C,1,1,3)->(C,3) + bias (C,);
    # Linear(C*emb_dim, 1): weight (1, C*emb_dim) + bias (1,)
    lim_conv = (6.0 / (3.0 + 3.0 * conv_out_channels)) ** 0.5
    conv_w = jax.random.uniform(k_cw, (conv_out_channels, 3), jnp.float32,
                                minval=-lim_conv, maxval=lim_conv)
    conv_b = jax.random.uniform(k_cb, (conv_out_channels,), jnp.float32,
                                minval=-0.1, maxval=0.1)
    lim_fc = (6.0 / (conv_out_channels * emb_dim + 1.0)) ** 0.5
    fc_w = jax.random.uniform(k_fw, (1, conv_out_channels * emb_dim), jnp.float32,
                              minval=-lim_fc, maxval=lim_fc)
    fc_b = jax.random.uniform(k_fb, (1,), jnp.float32, minval=-0.1, maxval=0.1)

    # batch_inputs: (B, 3) [head_idx, rel_idx, tail_idx]
    heads = jax.random.randint(k_bi, (batch,), 0, num_nodes)
    rels = jax.random.randint(jax.random.fold_in(k_bi, 1), (batch,), 0, num_relation)
    tails = jax.random.randint(jax.random.fold_in(k_bi, 2), (batch,), 0, num_nodes)
    batch_inputs = jnp.stack([heads, rels, tails], axis=1).astype(jnp.int32)

    ref = reference_forward(entity_emb, relation_emb, batch_inputs,
                            conv_w, conv_b, fc_w, fc_b)

    # f32 streaming: exact parity with the PyTorch module.
    out = spkbgat_conv_only_forward(entity_emb, relation_emb, batch_inputs,
                                    conv_w, conv_b, fc_w, fc_b)
    out = jax.block_until_ready(out)
    assert out.shape == (batch, 1)
    assert jnp.allclose(out, ref, atol=1e-4, rtol=1e-4), float(jnp.max(jnp.abs(out - ref)))

    # bf16 streaming of gathered embeddings (halved HBM stream; f32 MXU accumulation in-kernel).
    out_bf16 = spkbgat_conv_only_forward(entity_emb, relation_emb, batch_inputs,
                                         conv_w, conv_b, fc_w, fc_b,
                                         stream_dtype=jnp.bfloat16)
    out_bf16 = jax.block_until_ready(out_bf16)
    assert jnp.allclose(out_bf16, ref, atol=5e-2, rtol=5e-2), float(jnp.max(jnp.abs(out_bf16 - ref)))

    print("KERNEL_OK")
</pallas_src>

<mosaic_0001>
module attributes {stable_mosaic.version = 11 : i64} {
  func.func @convkb_kernel(%arg0: i32, %arg1: memref<1xf32, #tpu.memory_space<smem>>, %arg2: memref<96x256xf32, #tpu.memory_space<vmem>>, %arg3: memref<128x96xf32, #tpu.memory_space<vmem>>, %arg4: memref<128x1xf32, #tpu.memory_space<vmem>>, %arg5: memref<1x128xf32, #tpu.memory_space<vmem>>, %arg6: memref<1x256xf32, #tpu.memory_space<vmem>>) attributes {dimension_semantics = [#tpu.dimension_semantics<parallel>], iteration_bounds = array<i64: 2>, scalar_prefetch = 0 : i64, scratch_operands = 0 : i64, tpu.core_type = #tpu.core_type<tc>, window_params = [{transform_indices = @transform_0, window_bounds = array<i64: 1>}, {transform_indices = @transform_1, window_bounds = array<i64: 96, 256>}, {pipeline_mode = #tpu.pipeline_mode<synchronous>, transform_indices = @transform_2, window_bounds = array<i64: 128, 96>}, {pipeline_mode = #tpu.pipeline_mode<synchronous>, transform_indices = @transform_3, window_bounds = array<i64: 128, 1>}, {pipeline_mode = #tpu.pipeline_mode<synchronous>, transform_indices = @transform_4, window_bounds = array<i64: 1, 128>}, {transform_indices = @transform_5, window_bounds = array<i64: 1, 256>}]} {
    %c0 = arith.constant 0 : index
    %c0_0 = arith.constant 0 : index
    %0 = vector.load %arg2[%c0, %c0_0] : memref<96x256xf32, #tpu.memory_space<vmem>>, vector<96x256xf32>
    %c0_1 = arith.constant 0 : index
    %c0_2 = arith.constant 0 : index
    %1 = vector.load %arg3[%c0_1, %c0_2] : memref<128x96xf32, #tpu.memory_space<vmem>>, vector<128x96xf32>
    %cst = arith.constant dense<0.000000e+00> : vector<128x256xf32>
    %2 = tpu.matmul %1, %0, %cst {dimension_numbers = #tpu.dot_dimension_numbers<[1], [0], [0], [1], [0, 0, 1, 1], [], []>} : vector<128x96xf32>, vector<96x256xf32>, vector<128x256xf32> -> vector<128x256xf32>
    %c0_3 = arith.constant 0 : index
    %c0_4 = arith.constant 0 : index
    %3 = vector.load %arg4[%c0_3, %c0_4] : memref<128x1xf32, #tpu.memory_space<vmem>>, vector<128x1xf32>
    %4 = vector.broadcast %3 : vector<128x1xf32> to vector<128x256xf32>
    %5 = arith.addf %2, %4 : vector<128x256xf32>
    %cst_5 = arith.constant 0.000000e+00 : f32
    %6 = vector.broadcast %cst_5 : f32 to vector<128x256xf32>
    %7 = arith.maximumf %5, %6 : vector<128x256xf32>
    %c0_6 = arith.constant 0 : index
    %c0_7 = arith.constant 0 : index
    %8 = vector.load %arg5[%c0_6, %c0_7] : memref<1x128xf32, #tpu.memory_space<vmem>>, vector<1x128xf32>
    %cst_8 = arith.constant dense<0.000000e+00> : vector<1x256xf32>
    %9 = tpu.matmul %8, %7, %cst_8 {dimension_numbers = #tpu.dot_dimension_numbers<[1], [0], [0], [1], [0, 0, 1, 1], [], []>} : vector<1x128xf32>, vector<128x256xf32>, vector<1x256xf32> -> vector<1x256xf32>
    %c0_9 = arith.constant 0 : index
    %10 = memref.load %arg1[%c0_9] : memref<1xf32, #tpu.memory_space<smem>>
    %11 = vector.broadcast %10 : f32 to vector<1x256xf32>
    %12 = arith.addf %9, %11 : vector<1x256xf32>
    %c0_10 = arith.constant 0 : index
    %c0_11 = arith.constant 0 : index
    %13 = vector.load %arg6[%c0_10, %c0_11] : memref<1x256xf32, #tpu.memory_space<vmem>>, vector<1x256xf32>
    tpu.vector_store %arg6[%c0_10, %c0_11], %12 {strides = array<i32>} : memref<1x256xf32, #tpu.memory_space<vmem>>, vector<1x256xf32>,
    return
  }
  func.func @transform_0(%arg0: i32) -> i32 {
    %c0_i32 = arith.constant 0 : i32
    %c0_i32_0 = arith.constant 0 : i32
    return %c0_i32 : i32
  }
  func.func @transform_1(%arg0: i32) -> (i32, i32) {
    %c0_i32 = arith.constant 0 : i32
    %c0_i32_0 = arith.constant 0 : i32
    return %c0_i32, %arg0 : i32, i32
  }
  func.func @transform_2(%arg0: i32) -> (i32, i32) {
    %c0_i32 = arith.constant 0 : i32
    %c0_i32_0 = arith.constant 0 : i32
    %c0_i32_1 = arith.constant 0 : i32
    return %c0_i32, %c0_i32_0 : i32, i32
  }
  func.func @transform_3(%arg0: i32) -> (i32, i32) {
    %c0_i32 = arith.constant 0 : i32
    %c0_i32_0 = arith.constant 0 : i32
    %c0_i32_1 = arith.constant 0 : i32
    return %c0_i32, %c0_i32_0 : i32, i32
  }
  func.func @transform_4(%arg0: i32) -> (i32, i32) {
    %c0_i32 = arith.constant 0 : i32
    %c0_i32_0 = arith.constant 0 : i32
    %c0_i32_1 = arith.constant 0 : i32
    return %c0_i32, %c0_i32_0 : i32, i32
  }
  func.func @transform_5(%arg0: i32) -> (i32, i32) {
    %c0_i32 = arith.constant 0 : i32
    %c0_i32_0 = arith.constant 0 : i32
    return %c0_i32, %arg0 : i32, i32
  }
}

</mosaic_0001>

<bundles_post_ra>
// kernel: tpu_custom_call.1
= control target key start
LH: loop header
LB: loop body
LE: loop exit
PB: predicated region body
PF: predicated region fallthrough
CT: control target
= control target key end

     0   :  { %s1370_s0 = inlined_call_operand.<no memory space> [shape: f32[1], index: 0, kind: input, shape index: {}]   ;;  %s1371_s1 = inlined_call_operand.hbm [shape: f32[96,512], index: 1, kind: input, shape index: {}]   ;;  %s1372_s2 = inlined_call_operand.vmem [shape: f32[128,96], index: 2, kind: input, shape index: {}]   ;;  %s1373_s3 = inlined_call_operand.vmem [shape: f32[128,1], index: 3, kind: input, shape index: {}]   ;;  %s1374_s4 = inlined_call_operand.vmem [shape: f32[1,128], index: 4, kind: input, shape index: {}]   ;;  %s1375_s5 = inlined_call_operand.hbm [shape: f32[1,512], index: 5, kind: output, shape index: {}]  }
   0x1   :  { %10 = sst [smem:[#allocation2]] %s1370_s0 }
   0x2   :  { %11 = vsyncpa [#allocation4], 0 }
   0x3   :  { %13 = vsyncpa [#allocation4 + $0x1], 0 }
   0x4   :  { %14 = vsyncpa [#allocation5], 0 }
   0x5   :  { %16 = vsyncpa [#allocation5 + $0x1], 0  ;;  %s1027_s20 = smov 0   ;;  %s1029_s21 = smov 0  }
   0x6   :  { %s1031_s22 = smov 0   ;;  %s1033_s23 = smov 0  }
   0x7 LB: > { %s1048_s0 = sadd.s32 4294967295, %s984_s23   ;;  %s806_s24 = sadd.s32 4294967294, %s984_s23   ;;  %s984_s23 = sphi %s1033_s23, %s1390_s23   ;;  %s980_s22 = sphi %s1031_s22, %s1389_s22   ;;  %s976_s21 = sphi %s1029_s21, %s1388_s21   ;;  %s972_s20 = sphi %s1027_s20, %s1387_s20  }
   0x8   : > { %s1052_s25 = sadd.s32 1, %s984_s23   ;;  %s50_s26 = sadd.s32 1, %s980_s22 }
   0x9   : > { %s47_s27 = ssub.s32 %s984_s23, %s1052_s25  ;;  %p57_p0 = scmp.ne.s32.totalorder %s980_s22, %s976_s21 }
   0xa   : > { %p48_p1 = scmp.eq.s32.totalorder %s47_s27, 0  ;;  %p58_p2 = scmp.eq.s32.totalorder %s984_s23, 0 }
   0xb   : > { %p63_p3 = scmp.ne.s32.totalorder %s976_s21, %s972_s20  ;;  %p64_p4 = scmp.eq.s32.totalorder %s1048_s0, 0 }
   0xc   : > { %s1064_s28 = scalar_select %p48_p1, %s980_s22, %s50_s26  }
   0xd   : > { %p59_p5 = por %p58_p2, %p57_p0  ;;  %p1066_p6 = por %p64_p4, %p63_p3 }
   0xe   : > { %p150_p7 = scmp.eq.s32.totalorder %s1048_s0, 1  ;;  %p156_p8 = scmp.eq.s32.totalorder %s806_s24, 1 }
   0xf   : > { %s1378_s29 = scalar_select %p1066_p6, 1, 0 }
  0x10   : > { %p850_p10 = scmp.lt.s32.totalorder %s984_s23, 2  ;;  %p1073_p11 = por %p150_p7, %p57_p0 }
  0x11   : > { %p1077_p12 = por %p156_p8, %p63_p3  ;;  %s188_s7 = sand.u32 1, %s980_s22  }
  0x12   : > { %s1379_s30 = scalar_select %p1073_p11, 1, 0 }
  0x13   : > { %s1380_s6 = scalar_select %p1077_p12, 1, 0 }
  0x14   : > { %s834_s8 = sshll.u32 %s984_s23, 8  ;;  %s836_s9 = smul.u32 192, %s188_s7 }
  0x15   : > { %s1086_s12 = scalar_lea.hbm %s1371_s1, %s834_s8  ;;  %p1088_p13 = pnand %p850_p10, %p59_p5 }
  0x16   : > { %s192_s14 = scalar_lea.vmem [#allocation3], %s836_s9  ;;  %s1095_s16 = scalar_lea.sflag [#allocation4], %s188_s7 }
  0x17   : > { %s199_s15 = sshll.u32 %s192_s14, 4  ;;  %s892_s17 = scalar_lea.hbm %s1086_s12, 3072  ;;  %s1092_s15 = int_to_ptr.vmem [resolvable:$true] %s199_s15 }
  0x18   : > { %p893_p1 = scmp.ne.s32.totalorder %s1086_s12, %s892_s17  ;;  %p894_p2 = pneg %p1088_p13 }
  0x19   : > { %s897_s24 = scalar_lea.hbm %s1371_s1, 6144  ;;  %p898_p5 = scmp.lt.s32.totalorder %s1086_s12, %s1371_s1 }
  0x1a   : > { %p895_p3 = pnand %p894_p2, %p893_p1  ;;  %p899_p7 = scmp.lt.s32.totalorder %s897_s24, %s892_s17 }
  0x1c   : > { %p896_p4 = pneg %p895_p3  ;;  %p900_p8 = por %p899_p7, %p898_p5 }
  0x1e   : > { %p901_p10 = pnand %p900_p8, %p896_p4 }
  0x20   : > { %904 = shalt.err (!%p901_p10)
}
  0x21   : > { %s905_s7 = scalar_lea.vmem %s1092_s15, 3072  ;;  %s986_s8 = smov [#allocation3]  }
  0x22   : > { %p906_p9 = scmp.ne.s32.totalorder %s1092_s15, %s905_s7  ;;  %s910_s9 = sshll.u32 %s986_s8, 4  ;;  %s911_s9 = int_to_ptr.vmem [resolvable:$false] %s910_s9 }
  0x23   : > { %s912_s10 = scalar_lea.vmem %s911_s9, 6144  ;;  %p913_p3 = scmp.lt.s32.totalorder %s1092_s15, %s911_s9 }
  0x24   : > { %p908_p0 = pnand %p906_p9, %p894_p2  ;;  %p914_p12 = scmp.lt.s32.totalorder %s912_s10, %s905_s7 }
  0x26   : > { %p909_p1 = pneg %p908_p0  ;;  %p915_p11 = por %p914_p12, %p913_p3 }
  0x28   : > { %p916_p6 = pnand %p915_p11, %p909_p1 }
  0x2a   : > { %919 = shalt.err (!%p916_p6)
}
  0x2b   : > { %s987_s11 = smov 512   ;;  %s988_s14 = smov 256  }
  0x2c   : > { %s989_s17 = smov 16   ;;  %p207_p9 = scmp.lt.s32.totalorder %s984_s23, 3 }
  0x2d   : > { %845 = dma.hbm_to_vmem [thread:$0]  (!%p1088_p13), %s1086_s12, 3072, %s1092_s15, %s1095_s16, %s987_s11, %s988_s14, %s989_s17  }
  0x2e   : > { %p1382_p0 = scmp.ge.s32.totalorder %s984_s23, 1 }
  0x30   : > { %p208_p2 = pnand %p1382_p0, %p207_p9 }
  0x31   : > { %s1120_s18 = sand.u32 (!%p208_p2), 1, %s976_s21   ;;  %p1383_p6 = scmp.ne.s32.totalorder (!%p208_p2), %s1378_s29, 0 }
  0x32   : > { %211 = sbr.rel (%p208_p2) target bundleno = 590 (0x24e), region = 40  ;;  %s214_s24 = scalar_lea.sflag (!%p208_p2), [#allocation4], %s1120_s18 }
  0x33   : > { %s837_s19 = smul.u32 (!%p208_p2), 192, %s1120_s18 }
  0x35   : > { %s1124_s26 = scalar_lea.vmem (!%p208_p2), [#allocation3], %s837_s19 }
  0x37   : > { %963 = dma.done.wait (%p1383_p6), %s214_s24, 3072  }
  0x38   : > { %965 = vsyncadd (%p1383_p6), %s214_s24, 4294964224  ;;  %v990_v0 = vmov 0.0   ;;  %v991_v1 = vmov 0   ;;  %v269_v2 = vld [vmem:[%s1124_s26 + $0xb8] sm:$0xff]  ;;  %v268_v3 = vld [vmem:[%s1124_s26 + $0xb0] sm:$0xff]  ;;  %vm382_vm0 = vcmask 785408  }
  0x39   : > { %495 = vmatprep.mubr.f32.mxu0 %v990_v0  ;;  %891 = vset.pattern.permute.xlu1 %v991_v1  ;;  %v267_v4 = vld [vmem:[%s1124_s26 + $0xa8] sm:$0xff]  ;;  %v266_v5 = vld [vmem:[%s1124_s26 + $0xa0] sm:$0xff]  ;;  %v265_v6 = vld [vmem:[%s1124_s26 + $0x98] sm:$0xff]  ;;  %s812_s15 = sshll.u32 %s1120_s18, 1  ;;  %s835_s16 = sshll.u32 %s1048_s0, 5 }
  0x3a   : > { %890 = vset.pattern.permute.xlu0 %v991_v1  ;;  %691 = vmatprep.mubr.f32.mxu1 %v990_v0  ;;  %v264_v7 = vld [vmem:[%s1124_s26 + $0x90] sm:$0xff]  ;;  %v263_v8 = vld [vmem:[%s1124_s26 + $0x88] sm:$0xff]  ;;  %v262_v9 = vld [vmem:[%s1124_s26 + $0x80] sm:$0xff]  ;;  %s243_s27 = scalar_lea.vmem [#allocation6], %s812_s15  ;;  %s734_s10 = scalar_lea.hbm %s1375_s5, %s835_s16 }
  0x3b   : > { %439 = vmatprep.subr.mxu0 %v269_v2  ;;  %v261_v10 = vld [vmem:[%s1124_s26 + $0x78] sm:$0xff]  ;;  %v260_v11 = vld [vmem:[%s1124_s26 + $0x70] sm:$0xff]  ;;  %v259_v12 = vld [vmem:[%s1124_s26 + $0x68] sm:$0xff]  ;;  %s736_s7 = sshll.u32 %s243_s27, 4  ;;  %s722_s11 = scalar_lea.sflag [#allocation5], %s1120_s18  ;;  %s737_s7 = int_to_ptr.vmem [resolvable:$true] %s736_s7 }
  0x3c   : > { %440 = vmatpush1.msra.mxu0 %v268_v3  ;;  %v258_v13 = vld [vmem:[%s1124_s26 + $0x60] sm:$0xff]  ;;  %v257_v14 = vld [vmem:[%s1124_s26 + $0x58] sm:$0xff]  ;;  %v256_v15 = vld [vmem:[%s1124_s26 + $0x50] sm:$0xff]  ;;  %s920_s14 = scalar_lea.vmem %s737_s7, 32  ;;  %p1384_p12 = scmp.ne.s32.totalorder %s1379_s30, 0 }
  0x3d   : > { %441 = vmatprep.subr.mxu0 %v267_v4  ;;  %v299_v16 = vld [vmem:[%s1373_s3 + $0x68] sm:$0xff]  ;;  %v301_v18 = vld [vmem:[%s1373_s3 + $0x78] sm:$0xff]  ;;  %v254_v19 = vld [vmem:[%s1124_s26 + $0x40] sm:$0xff]  ;;  %p921_p11 = scmp.ne.s32.totalorder %s737_s7, %s920_s14  ;;  %s993_s17 = smov [#allocation6]  }
  0x3e   : > { %442 = vmatpush1.msra.mxu0 %v266_v5  ;;  %v255_v17 = vld [vmem:[%s1124_s26 + $0x48] sm:$0xff]  ;;  %369 = vperm.xlu1 %891, %v299_v16   ;;  %v298_v20 = vld [vmem:[%s1373_s3 + $0x60] sm:$0xff]  ;;  %v253_v21 = vld [vmem:[%s1124_s26 + $0x38] sm:$0xff]  ;;  %s924_s19 = sshll.u32 %s993_s17, 4  ;;  %s925_s19 = int_to_ptr.vmem [resolvable:$false] %s924_s19 }
  0x3f   : > { %443 = vmatprep.subr.mxu0 %v265_v6  ;;  %379 = vperm.xlu0 %890, %v301_v18   ;;  %v300_v22 = vld [vmem:[%s1373_s3 + $0x70] sm:$0xff]  ;;  %v251_v24 = vld [vmem:[%s1124_s26 + $0x28] sm:$0xff]  ;;  %v250_v25 = vld [vmem:[%s1124_s26 + $0x20] sm:$0xff]  ;;  %p922_p13 = pnand %p921_p11, %p1384_p12  ;;  %s926_s0 = scalar_lea.vmem %s925_s19, 64 }
  0x40   : > { %444 = vmatpush1.msra.mxu0 %v264_v7  ;;  %v252_v23 = vld [vmem:[%s1124_s26 + $0x30] sm:$0xff]  ;;  %v249_v27 = vld [vmem:[%s1124_s26 + $0x18] sm:$0xff]  ;;  %v247_v30 = vld [vmem:[%s1124_s26 + $0x8] sm:$0xff]  ;;  %p927_p5 = scmp.lt.s32.totalorder %s737_s7, %s925_s19  ;;  %p928_p7 = scmp.lt.s32.totalorder %s926_s0, %s920_s14 }
  0x41   : > { %445 = vmatprep.subr.mxu0 %v263_v8  ;;  %v296_v26 = vld [vmem:[%s1373_s3 + $0x50] sm:$0xff]  ;;  %v297_v28 = vld [vmem:[%s1373_s3 + $0x58] sm:$0xff]  ;;  %v246_v31 = vld [vmem:[%s1124_s26] sm:$0xff]  ;;  %p923_p4 = pneg %p922_p13 }
  0x42   : > { %446 = vmatpush1.msra.mxu0 %v262_v9  ;;  %364 = vperm.xlu1 %891, %v298_v20   ;;  %v248_v29 = vld [vmem:[%s1124_s26 + $0x10] sm:$0xff]  ;;  %v294_v32 = vld [vmem:[%s1373_s3 + $0x40] sm:$0xff]  ;;  %v295_v34 = vld [vmem:[%s1373_s3 + $0x48] sm:$0xff]  ;;  %s625_s26 = sld [smem:[#allocation2]]  ;;  %p929_p8 = por %p928_p7, %p927_p5 }
  0x43   : > { %447 = vmatprep.subr.mxu0 %v261_v10  ;;  %374 = vperm.xlu0 %890, %v300_v22   ;;  %v270_v33 = vld [vmem:[%s1372_s2] sm:$0xff]  ;;  %v292_v35 = vld [vmem:[%s1373_s3 + $0x30] sm:$0xff]  ;;  %v271_v36 = vld [vmem:[%s1372_s2 + $0x8] sm:$0xff] }
  0x44   : > { %448 = vmatpush1.msra.mxu0 %v260_v11  ;;  %v293_v37 = vld [vmem:[%s1373_s3 + $0x38] sm:$0xff]  ;;  %v290_v38 = vld [vmem:[%s1373_s3 + $0x20] sm:$0xff]  ;;  %v272_v39 = vld [vmem:[%s1372_s2 + $0x10] sm:$0xff]  ;;  %p930_p10 = pnand %p929_p8, %p923_p4 }
  0x45   : > { %449 = vmatprep.subr.mxu0 %v259_v12  ;;  %v291_v40 = vld [vmem:[%s1373_s3 + $0x28] sm:$0xff]  ;;  %v288_v41 = vld [vmem:[%s1373_s3 + $0x10] sm:$0xff]  ;;  %v273_v42 = vld [vmem:[%s1372_s2 + $0x18] sm:$0xff] }
  0x46   : > { %450 = vmatpush1.msra.mxu0 %v258_v13  ;;  %354 = vperm.xlu1 %891, %v296_v26   ;;  %v289_v43 = vld [vmem:[%s1373_s3 + $0x18] sm:$0xff]  ;;  %v286_v44 = vld [vmem:[%s1373_s3] sm:$0xff]  ;;  %v287_v46 = vld [vmem:[%s1373_s3 + $0x8] sm:$0xff] }
  0x47   : > { %451 = vmatprep.subr.mxu0 %v257_v14  ;;  %359 = vperm.xlu0 %890, %v297_v28   ;;  %v274_v45 = vld [vmem:[%s1372_s2 + $0x20] sm:$0xff]  ;;  %v275_v47 = vld [vmem:[%s1372_s2 + $0x28] sm:$0xff]  ;;  %v276_v48 = vld [vmem:[%s1372_s2 + $0x30] sm:$0xff] }
  0x48   : > { %452 = vmatpush1.msra.mxu0 %v256_v15  ;;  %v277_v49 = vld [vmem:[%s1372_s2 + $0x38] sm:$0xff]  ;;  %v278_v50 = vld [vmem:[%s1372_s2 + $0x40] sm:$0xff]  ;;  %v279_v51 = vld [vmem:[%s1372_s2 + $0x48] sm:$0xff] }
  0x49   : > { %453 = vmatprep.subr.mxu0 %v255_v17  ;;  %v280_v52 = vld [vmem:[%s1372_s2 + $0x50] sm:$0xff]  ;;  %v281_v53 = vld [vmem:[%s1372_s2 + $0x58] sm:$0xff]  ;;  %v282_v54 = vld [vmem:[%s1372_s2 + $0x60] sm:$0xff] }
  0x4a   : > { %454 = vmatpush1.msra.mxu0 %v254_v19  ;;  %344 = vperm.xlu1 %891, %v294_v32   ;;  %v283_v55 = vld [vmem:[%s1372_s2 + $0x68] sm:$0xff]  ;;  %v284_v56 = vld [vmem:[%s1372_s2 + $0x70] sm:$0xff]  ;;  %v285_v57 = vld [vmem:[%s1372_s2 + $0x78] sm:$0xff] }
  0x4b   : > { %455 = vmatprep.subr.mxu0 %v253_v21  ;;  %349 = vperm.xlu0 %890, %v295_v34  }
  0x4c   : > { %456 = vmatpush1.msra.mxu0 %v252_v23 }
  0x4d   : > { %457 = vmatprep.subr.mxu0 %v251_v24 }
  0x4e   : > { %458 = vmatpush1.msra.mxu0 %v250_v25  ;;  %334 = vperm.xlu1 %891, %v292_v35  }
  0x4f   : > { %459 = vmatprep.subr.mxu0 %v249_v27  ;;  %339 = vperm.xlu0 %890, %v293_v37  }
  0x50   : > { %460 = vmatpush1.msra.mxu0 %v248_v29 }
  0x51   : > { %461 = vmatprep.subr.mxu0 %v247_v30 }
  0x52   : > { %462 = vmatpush1.msra.mxu0 %v246_v31  ;;  %324 = vperm.xlu1 %891, %v290_v38  }
  0x53   : > { %813 = vmatmul.mubr.msk.f32.vlgmr.msra.gmra.mxu0 %vm382_vm0, %v270_v33  ;;  %329 = vperm.xlu0 %890, %v291_v40  }
  0x54   : > { %501 = vmatprep.mubr.f32.mxu0 %v990_v0 }
  0x56   : > { %314 = vperm.xlu1 %891, %v288_v41  }
  0x57   : > { %814 = vmatmul.mubr.msk.f32.gmra.mxu0 %vm382_vm0, %v271_v36  ;;  %319 = vperm.xlu0 %890, %v289_v43  }
  0x58   : > { %507 = vmatprep.mubr.f32.mxu0 %v990_v0 }
  0x5a   : > { %304 = vperm.xlu1 %891, %v286_v44  }
  0x5b   : > { %815 = vmatmul.mubr.msk.f32.gmra.mxu0 %vm382_vm0, %v272_v39  ;;  %309 = vperm.xlu0 %890, %v287_v46  }
  0x5c   : > { %513 = vmatprep.mubr.f32.mxu0 %v990_v0 }
  0x5f   : > { %816 = vmatmul.mubr.msk.f32.gmra.mxu0 %vm382_vm0, %v273_v42 }
  0x60   : > { %519 = vmatprep.mubr.f32.mxu0 %v990_v0 }
  0x63   : > { %817 = vmatmul.mubr.msk.f32.gmra.mxu0 %vm382_vm0, %v274_v45 }
  0x64   : > { %525 = vmatprep.mubr.f32.mxu0 %v990_v0 }
  0x67   : > { %818 = vmatmul.mubr.msk.f32.gmra.mxu0 %vm382_vm0, %v275_v47 }
  0x68   : > { %531 = vmatprep.mubr.f32.mxu0 %v990_v0 }
  0x6b   : > { %819 = vmatmul.mubr.msk.f32.gmra.mxu0 %vm382_vm0, %v276_v48 }
  0x6c   : > { %537 = vmatprep.mubr.f32.mxu0 %v990_v0 }
  0x6f   : > { %820 = vmatmul.mubr.msk.f32.gmra.mxu0 %vm382_vm0, %v277_v49 }
  0x70   : > { %543 = vmatprep.mubr.f32.mxu0 %v990_v0 }
  0x73   : > { %821 = vmatmul.mubr.msk.f32.gmra.mxu0 %vm382_vm0, %v278_v50 }
  0x74   : > { %549 = vmatprep.mubr.f32.mxu0 %v990_v0 }
  0x77   : > { %822 = vmatmul.mubr.msk.f32.gmra.mxu0 %vm382_vm0, %v279_v51 }
  0x78   : > { %555 = vmatprep.mubr.f32.mxu0 %v990_v0 }
  0x7b   : > { %823 = vmatmul.mubr.msk.f32.gmra.mxu0 %vm382_vm0, %v280_v52 }
  0x7c   : > { %561 = vmatprep.mubr.f32.mxu0 %v990_v0 }
  0x7f   : > { %824 = vmatmul.mubr.msk.f32.gmra.mxu0 %vm382_vm0, %v281_v53 }
  0x80   : > { %567 = vmatprep.mubr.f32.mxu0 %v990_v0 }
  0x83   : > { %825 = vmatmul.mubr.msk.f32.gmra.mxu0 %vm382_vm0, %v282_v54 }
  0x84   : > { %573 = vmatprep.mubr.f32.mxu0 %v990_v0 }
  0x87   : > { %826 = vmatmul.mubr.msk.f32.gmra.mxu0 %vm382_vm0, %v283_v55 }
  0x88   : > { %579 = vmatprep.mubr.f32.mxu0 %v990_v0 }
  0x8b   : > { %827 = vmatmul.mubr.msk.f32.gmra.mxu0 %vm382_vm0, %v284_v56 }
  0x8c   : > { %585 = vmatprep.mubr.f32.mxu0 %v990_v0 }
  0x8f   : > { %828 = vmatmul.mubr.msk.f32.gmra.mxu0 %vm382_vm0, %v285_v57 }
  0xb9   : > { %v370_v19 = vpop.permute.xlu1 %369 }
  0xba   : > { %v380_v17 = vpop.permute.xlu0 %379 }
  0xbd   : > { %v365_v24 = vpop.permute.xlu1 %364 }
  0xbe   : > { %v375_v22 = vpop.permute.xlu0 %374 }
  0xc1   : > { %v355_v29 = vpop.permute.xlu1 %354 }
  0xc2   : > { %v360_v27 = vpop.permute.xlu0 %359 }
  0xc5   : > { %v345_v37 = vpop.permute.xlu1 %344 }
  0xc6   : > { %v350_v33 = vpop.permute.xlu0 %349 }
  0xc9   : > { %v335_v51 = vpop.permute.xlu1 %334 }
  0xca   : > { %v340_v46 = vpop.permute.xlu0 %339 }
 0x113   : > { %v1283_v58 = vpop.f32.mrf.mxu0 }
 0x115   : > { %v1285_v59 = vpop.f32.mrf.mxu0 }
 0x117   : > { %v1287_v60 = vpop.f32.mrf.mxu0 }
 0x119   : > { %v1289_v61 = vpop.f32.mrf.mxu0 }
 0x11b   : > { %v1291_v62 = vpop.f32.mrf.mxu0 }
 0x11d   : > { %v1293_v63 = vpop.f32.mrf.mxu0 }
 0x11f   : > { %v1295_v1 = vpop.f32.mrf.mxu0 }
 0x121   : > { %v1297_v0 = vpop.f32.mrf.mxu0 }
 0x123   : > { %v1299_v2 = vpop.f32.mrf.mxu0 }
 0x125   : > { %v1301_v3 = vpop.f32.mrf.mxu0 }
 0x127   : > { %v1303_v4 = vpop.f32.mrf.mxu0 }
 0x129   : > { %v1305_v5 = vpop.f32.mrf.mxu0 }
 0x12b   : > { %v1307_v6 = vpop.f32.mrf.mxu0 }
 0x12d   : > { %v1309_v7 = vpop.f32.mrf.mxu0 }
 0x12f   : > { %v1311_v8 = vpop.f32.mrf.mxu0 }
 0x131   : > { %v1313_v9 = vpop.f32.mrf.mxu0 }
 0x133   : > { %v545_v10 = vpop.f32.mrf.mxu0 }
 0x135   : > { %v547_v11 = vpop.f32.mrf.mxu0 }
 0x137   : > { %v551_v12 = vpop.f32.mrf.mxu0 }
 0x139   : > { %v553_v13 = vpop.f32.mrf.mxu0 }
 0x13a   : > { %v554_v56 = vadd.f32 %v553_v13, %v350_v33 }
 0x13b   : > { %v557_v14 = vpop.f32.mrf.mxu0 }
 0x13c   : > { %v558_v54 = vadd.f32 %v557_v14, %v355_v29  ;;  %v540_v14 = vadd.f32 %v1311_v8, %v340_v46 }
 0x13d   : > { %v559_v15 = vpop.f32.mrf.mxu0 }
 0x13e   : > { %v560_v52 = vadd.f32 %v559_v15, %v355_v29  ;;  %v542_v15 = vadd.f32 %v1313_v9, %v340_v46  ;;  %v606_v29 = vmax.f32 %v540_v14, 0.0 }
 0x13f   : > { %v563_v16 = vpop.f32.mrf.mxu0 }
 0x140   : > { %v564_v49 = vadd.f32 %v563_v16, %v360_v27  ;;  %v546_v16 = vadd.f32 %v545_v10, %v345_v37 }
 0x141   : > { %v565_v18 = vpop.f32.mrf.mxu0 }
 0x142   : > { %v566_v47 = vadd.f32 %v565_v18, %v360_v27  ;;  %v548_v18 = vadd.f32 %v547_v11, %v345_v37  ;;  %v534_v11 = vadd.f32 %v1307_v6, %v335_v51 }
 0x143   : > { %v569_v20 = vpop.f32.mrf.mxu0 }
 0x144   : > { %v570_v44 = vadd.f32 %v569_v20, %v365_v24  ;;  %v615_v57 = vmax.f32 %v566_v47, 0.0  ;;  %v330_v20 = vpop.permute.xlu0 %329 }
 0x145   : > { %v571_v21 = vpop.f32.mrf.mxu0  ;;  %v530_v27 = vadd.f32 %v1305_v5, %v330_v20  ;;  %v528_v9 = vadd.f32 %v1303_v4, %v330_v20 }
 0x146   : > { %v572_v42 = vadd.f32 %v571_v21, %v365_v24  ;;  %v616_v55 = vmax.f32 %v570_v44, 0.0  ;;  %v613_v21 = vmax.f32 %v560_v52, 0.0  ;;  %v611_v24 = vmax.f32 %v554_v56, 0.0 }
 0x147   : > { %v575_v23 = vpop.f32.mrf.mxu0 }
 0x148   : > { %v576_v40 = vadd.f32 %v575_v23, %v370_v19  ;;  %v617_v53 = vmax.f32 %v572_v42, 0.0  ;;  %v325_v23 = vpop.permute.xlu1 %324  ;;  %v320_v10 = vpop.permute.xlu0 %319 }
 0x149   : > { %v577_v25 = vpop.f32.mrf.mxu0  ;;  %v518_v6 = vadd.f32 %v1297_v0, %v320_v10  ;;  %v516_v5 = vadd.f32 %v1295_v1, %v320_v10 }
 0x14a   : > { %v578_v38 = vadd.f32 %v577_v25, %v370_v19  ;;  %v618_v50 = vmax.f32 %v576_v40, 0.0  ;;  %v614_v19 = vmax.f32 %v564_v49, 0.0  ;;  %v609_v25 = vmax.f32 %v548_v18, 0.0 }
 0x14b   : > { %v581_v26 = vpop.f32.mrf.mxu0  ;;  %v598_v40 = vmax.f32 %v516_v5, 0.0 }
 0x14c   : > { %v582_v36 = vadd.f32 %v581_v26, %v375_v22  ;;  %v619_v48 = vmax.f32 %v578_v38, 0.0  ;;  %v608_v26 = vmax.f32 %v546_v16, 0.0  ;;  %v315_v8 = vpop.permute.xlu1 %314  ;;  %v310_v4 = vpop.permute.xlu0 %309 }
 0x14d   : > { %v583_v28 = vpop.f32.mrf.mxu0  ;;  %v506_v38 = vadd.f32 %v1289_v61, %v310_v4  ;;  %v504_v0 = vadd.f32 %v1287_v60, %v310_v4  ;;  %v624_v60 = vld [vmem:[%s1374_s4] sm:$0x1] }
 0x14e   : > { %v584_v34 = vadd.f32 %v583_v28, %v375_v22  ;;  %v620_v45 = vmax.f32 %v582_v36, 0.0  ;;  %v612_v22 = vmax.f32 %v558_v54, 0.0  ;;  %v607_v28 = vmax.f32 %v542_v15, 0.0 }
 0x14f   : > { %v587_v30 = vpop.f32.mrf.mxu0 }
 0x150   : > { %v588_v31 = vadd.f32 %v587_v30, %v380_v17  ;;  %v621_v43 = vmax.f32 %v584_v34, 0.0  ;;  %v524_v30 = vadd.f32 %v1301_v3, %v325_v23  ;;  %v602_v34 = vmax.f32 %v528_v9, 0.0 }
 0x151   : > { %v589_v32 = vpop.f32.mrf.mxu0  ;;  %v510_v3 = vadd.f32 %v1291_v62, %v315_v8  ;;  %v595_v62 = vmax.f32 %v506_v38, 0.0 }
 0x152   : > { %v590_v35 = vadd.f32 %v589_v32, %v380_v17  ;;  %v622_v41 = vmax.f32 %v588_v31, 0.0  ;;  %v552_v17 = vadd.f32 %v551_v12, %v350_v33  ;;  %v536_v12 = vadd.f32 %v1309_v7, %v335_v51 }
 0x153   : > { %v522_v7 = vadd.f32 %v1299_v2, %v325_v23  ;;  %v604_v32 = vmax.f32 %v534_v11, 0.0  ;;  %v603_v33 = vmax.f32 %v530_v27, 0.0  ;;  %v601_v36 = vmax.f32 %v524_v30, 0.0  ;;  %v305_v2 = vpop.permute.xlu1 %304 }
 0x154   : > { %v623_v39 = vmax.f32 %v590_v35, 0.0  ;;  %v610_v13 = vmax.f32 %v552_v17, 0.0  ;;  %v605_v31 = vmax.f32 %v536_v12, 0.0  ;;  %v512_v35 = vadd.f32 %v1293_v63, %v315_v8 }
 0x155   : > { %v600_v37 = vmax.f32 %v522_v7, 0.0  ;;  %v500_v1 = vadd.f32 %v1285_v59, %v305_v2  ;;  %v498_v63 = vadd.f32 %v1283_v58, %v305_v2  ;;  %v596_v42 = vmax.f32 %v510_v3, 0.0 }
 0x156   : > { %627 = vmatprep.subr.mxu1 %v623_v39  ;;  %v599_v39 = vmax.f32 %v518_v6, 0.0  ;;  %v992_v58 = vmov 1966171168  }
 0x157   : > { %628 = vmatpush1.msra.mxu1 %v622_v41  ;;  %v597_v41 = vmax.f32 %v512_v35, 0.0  ;;  %v593_v44 = vmax.f32 %v500_v1, 0.0  ;;  %v592_v61 = vmax.f32 %v498_v63, 0.0  ;;  %v702_v59 = vunpack.c.l.s4 %v992_v58 }
 0x158   : > { %629 = vmatprep.subr.mxu1 %v621_v43  ;;  %v594_v43 = vmax.f32 %v504_v0, 0.0 }
 0x159   : > { %630 = vmatpush1.msra.mxu1 %v620_v45  ;;  %v704_v45 = vlaneseq  ;;  %v703_v46 = vunpack.c.0.s8 %v702_v59 }
 0x15a   : > { %631 = vmatprep.subr.mxu1 %v619_v48  ;;  %v626_v48 = vstv %s625_s26 }
 0x15b   : > { %632 = vmatpush1.msra.mxu1 %v618_v50  ;;  %v705_v47 = vshrl.u32 %v704_v45, 7  ;;  %vm718_vm1 = vcmp.lt.s32.totalorder %v704_v45, 256 }
 0x15c   : > { %633 = vmatprep.subr.mxu1 %v617_v53 }
 0x15d   : > { %634 = vmatpush1.msra.mxu1 %v616_v55  ;;  %v706_v53 = vsub.s32 %v703_v46, %v705_v47 }
 0x15e   : > { %635 = vmatprep.subr.mxu1 %v615_v57 }
 0x15f   : > { %636 = vmatpush1.msra.mxu1 %v614_v19 }
 0x160   : > { %637 = vmatprep.subr.mxu1 %v613_v21 }
 0x161   : > { %638 = vmatpush1.msra.mxu1 %v612_v22 }
 0x162   : > { %639 = vmatprep.subr.mxu1 %v611_v24 }
 0x163   : > { %640 = vmatpush1.msra.mxu1 %v610_v13 }
 0x164   : > { %641 = vmatprep.subr.mxu1 %v609_v25 }
 0x165   : > { %642 = vmatpush1.msra.mxu1 %v608_v26 }
 0x166   : > { %643 = vmatprep.subr.mxu1 %v607_v28 }
 0x167   : > { %644 = vmatpush1.msra.mxu1 %v606_v29 }
 0x168   : > { %645 = vmatprep.subr.mxu1 %v605_v31 }
 0x169   : > { %646 = vmatpush1.msra.mxu1 %v604_v32 }
 0x16a   : > { %647 = vmatprep.subr.mxu1 %v603_v33 }
 0x16b   : > { %648 = vmatpush1.msra.mxu1 %v602_v34 }
 0x16c   : > { %649 = vmatprep.subr.mxu1 %v601_v36 }
 0x16d   : > { %650 = vmatpush1.msra.mxu1 %v600_v37 }
 0x16e   : > { %651 = vmatprep.subr.mxu1 %v599_v39 }
 0x16f   : > { %652 = vmatpush1.msra.mxu1 %v598_v40 }
 0x170   : > { %653 = vmatprep.subr.mxu1 %v597_v41 }
 0x171   : > { %654 = vmatpush1.msra.mxu1 %v596_v42 }
 0x172   : > { %655 = vmatprep.subr.mxu1 %v595_v62 }
 0x173   : > { %656 = vmatpush1.msra.mxu1 %v594_v43 }
 0x174   : > { %657 = vmatprep.subr.mxu1 %v593_v44 }
 0x175   : > { %658 = vmatpush1.msra.mxu1 %v592_v61 }
 0x176   : > { %692 = vmatmul.mubr.f32.vlgmr.msra.gmra.mxu1 %v624_v60 }
 0x236   : > { %v693_v49 = vpop.f32.mrf.mxu1 }
 0x237   : > { %v694_v51 = vadd.f32 %v693_v49, %v626_v48 }
 0x238   : > { %v695_v50 = vpop.f32.mrf.mxu1 }
 0x239   : > { %v696_v52 = vadd.f32 %v695_v50, %v626_v48 }
 0x23b   : > { %v700_v54 = vcombine.low %v694_v51, %v696_v52 }
 0x23d   : > { %v707_v55 = vrot.slane %v700_v54, %v706_v53 }
 0x23f   : > { %v714_v56 = vrot.slane %v707_v55, %v706_v53 }
 0x241   : > { %720 = vst.msk [vmem:[%s243_s27] sm:$0x3] %vm718_vm1, %v714_v56 }
 0x242   : > { %933 = shalt.err (!%p930_p10)
}
 0x243   : > { %s934_s24 = scalar_lea.hbm %s734_s10, 32  ;;  %s938_s12 = scalar_lea.hbm %s1375_s5, 64 }
 0x244   : > { %p935_p1 = scmp.ne.s32.totalorder %s734_s10, %s934_s24  ;;  %p939_p0 = scmp.lt.s32.totalorder %s734_s10, %s1375_s5 }
 0x245   : > { %p940_p2 = scmp.lt.s32.totalorder %s938_s12, %s934_s24 }
 0x246   : > { %p936_p3 = pnand %p935_p1, %p1384_p12 }
 0x247   : > { %p941_p6 = por %p940_p2, %p939_p0 }
 0x248   : > { %p937_p9 = pneg %p936_p3 }
 0x24a   : > { %p942_p11 = pnand %p941_p6, %p937_p9 }
 0x24c   : > { %945 = shalt.err (!%p942_p11)
}
 0x24d   : > { %840 = dma.vmem_to_hbm [thread:$0]  (%p1384_p12), %s737_s7, 32, %s734_s10, %s722_s11  }
 0x24e PF: > { %s748_s15 = sand.u32 1, %s972_s20   ;;  %p1385_p13 = scmp.ne.s32.totalorder %s1380_s6, 0 }
 0x24f   : > { %p1386_p4 = scmp.ge.s32.totalorder %s984_s23, 2  ;;  %s749_s16 = scalar_lea.sflag [#allocation5], %s748_s15 }
 0x251   : > { %p847_p5 = pnand %p1386_p4, %p1385_p13 }
 0x253   : > { %p848_p7 = pneg %p847_p5 }
 0x255   : > { %967 = dma.done.wait (%p848_p7), %s749_s16, 32  }
 0x256   : > { %969 = vsyncadd (%p848_p7), %s749_s16, 4294967264  ;;  %p19_p8 = scmp.ge.s32.totalorder %s1052_s25, 4   ;;  %s1387_s20 = smov %s976_s21 }
 0x257   : > { %s1388_s21 = smov %s980_s22  ;;  %s1389_s22 = smov %s1064_s28 }
 0x258   : > { %s1390_s23 = smov %s1052_s25  ;;  %21 = sbr.rel (!%p19_p8) target bundleno = 7 (0x7), region = 85 }
 0x25d   :  { %754 = vsyncpa [#allocation4], 1 }
 0x25e   :  { %756 = vsyncpa [#allocation4 + $0x1], 1 }
 0x25f   :  { %757 = vsyncpa [#allocation5], 1 }
 0x260   :  { %759 = vsyncpa [#allocation5 + $0x1], 1 }

</bundles_post_ra>
